<compile_context>
chip_gen: v7x
topology: tpu7x:2x2x1
jax: 0.10.0
libtpu: 0.0.40
codegen_flags: <defaults>
</compile_context>

<pallas_src>
import jax
import jax.numpy as jnp
from jax.experimental import pallas as pl
from jax.experimental.pallas import tpu as pltpu


def _kl_div_kernel(p_ref, q_ref, o_ref):
    # p_ref, q_ref: (TB, D) tiles in VMEM.  o_ref: (TB, 128) per-row KL slab.
    p = p_ref[...].astype(jnp.float32)
    q = q_ref[...].astype(jnp.float32)

    # softmax(p) pieces (numerically safe, no full-tile divide).
    p_max = jnp.max(p, axis=-1, keepdims=True)                # (TB, 1)
    p_shift = p - p_max                                       # (TB, D)
    p_exp = jnp.exp(p_shift)                                  # (TB, D)
    p_sum = jnp.sum(p_exp, axis=-1, keepdims=True)            # (TB, 1)
    p_sm = p_exp * pl.reciprocal(p_sum)                       # (TB, D)

    # softmax(q): q_sm is materialized explicitly to keep the module's
    # `q + 1e-8` epsilon convention.
    q_max = jnp.max(q, axis=-1, keepdims=True)                # (TB, 1)
    q_exp = jnp.exp(q - q_max)                                # (TB, D)
    q_sum = jnp.sum(q_exp, axis=-1, keepdims=True)            # (TB, 1)
    q_sm = q_exp * pl.reciprocal(q_sum)                       # (TB, D)

    # KL(p || q) per row:
    #   sum p_sm * (log_p - log(q_sm + eps))
    # = sum p_sm * (p_shift - log(q_sm + eps)) - log(p_sum)
    # (since sum(p_sm) == 1), avoiding a separate full-tile log_p array and
    # the 0 * log(0) NaN hazard of the literal p*log(p/(q+eps)) form.
    inner = jnp.sum(p_sm * (p_shift - jnp.log(q_sm + 1e-8)),
                    axis=-1, keepdims=True)                   # (TB, 1)
    kl_row = inner - jnp.log(p_sum)                           # (TB, 1)

    # Lane-dense store (unmasked vst); wrapper reads column 0.
    o_ref[...] = jnp.broadcast_to(kl_row, o_ref.shape)


@jax.jit
def kl_div_loss(p, q):
    """Matches KL_div_loss.forward(p, q): returns a scalar float32."""
    b = p.shape[0]
    p2 = p.reshape(b, -1)
    q2 = q.reshape(b, -1)
    d = p2.shape[1]

    # --- batch tile size -----------------------------------------------------
    # Cap a single input tile at ~2 MiB of f32 so that double-buffered input
    # streams (2 inputs x 2 buffers) plus in-kernel f32 temporaries fit well
    # inside every generation's scoped VMEM (v7x has only 64 MiB physical).
    tile_bytes_budget = 2 * 1024 * 1024
    tb = (tile_bytes_budget // (4 * d)) // 8 * 8
    tb = max(8, min(1024, tb))
    # Do not overshoot small batches (avoid padding B=2 up to hundreds of rows).
    tb = min(tb, ((b + 7) // 8) * 8)

    b_pad = ((b + tb - 1) // tb) * tb
    if b_pad != b:
        pad = b_pad - b
        p2 = jnp.pad(p2, ((0, pad), (0, 0)))
        q2 = jnp.pad(q2, ((0, pad), (0, 0)))
    num_tiles = b_pad // tb

    kl_rows = pl.pallas_call(
        _kl_div_kernel,
        out_shape=jax.ShapeDtypeStruct((b_pad, 128), jnp.float32),
        grid=(num_tiles,),
        in_specs=[
            pl.BlockSpec((tb, d), lambda i: (i, 0)),
            pl.BlockSpec((tb, d), lambda i: (i, 0)),
        ],
        out_specs=pl.BlockSpec((tb, 128), lambda i: (i, 0)),
        compiler_params=pltpu.CompilerParams(
            dimension_semantics=("parallel",),
            vmem_limit_bytes=48 * 1024 * 1024,
        ),
    )(p2, q2)

    # Final mean over the *true* batch only (pad rows sliced away), done in
    # XLA: noise-level cost, and keeps the grid axis fully parallel.
    return jnp.mean(kl_rows[:b, 0])


if __name__ == "__main__":
    key = jax.random.PRNGKey(0)
    kp, kq = jax.random.split(key)

    # Small NCHW-shaped logits, as the module's reshape(B, -1) implies.
    B, C, H, W = 2, 4, 16, 16
    p = jax.random.normal(kp, (B, C, H, W), dtype=jnp.float32)
    q = jax.random.normal(kq, (B, C, H, W), dtype=jnp.float32)

    result = jax.block_until_ready(kl_div_loss(p, q))

    # Pure-JAX reference (same math as the PyTorch module).
    p2 = p.reshape(B, -1)
    q2 = q.reshape(B, -1)
    p_sm = jax.nn.softmax(p2, axis=-1)
    q_sm = jax.nn.softmax(q2, axis=-1)
    ref = jnp.mean(jnp.sum(p_sm * jnp.log(p_sm / (q_sm + 1e-8)), axis=-1))
    assert jnp.allclose(result, ref, atol=1e-5, rtol=1e-5), (result, ref)

    print("KERNEL_OK")
</pallas_src>

<mosaic_0001>
module attributes {stable_mosaic.version = 11 : i64} {
  func.func @_kl_div_kernel(%arg0: i32, %arg1: memref<8x1024xf32, #tpu.memory_space<vmem>>, %arg2: memref<8x1024xf32, #tpu.memory_space<vmem>>, %arg3: memref<8x128xf32, #tpu.memory_space<vmem>>) attributes {dimension_semantics = [#tpu.dimension_semantics<parallel>], iteration_bounds = array<i64: 1>, scalar_prefetch = 0 : i64, scratch_operands = 0 : i64, tpu.core_type = #tpu.core_type<tc>, window_params = [{transform_indices = @transform_0, window_bounds = array<i64: 8, 1024>}, {transform_indices = @transform_1, window_bounds = array<i64: 8, 1024>}, {transform_indices = @transform_2, window_bounds = array<i64: 8, 128>}]} {
    %c0 = arith.constant 0 : index
    %c0_0 = arith.constant 0 : index
    %0 = vector.load %arg1[%c0, %c0_0] : memref<8x1024xf32, #tpu.memory_space<vmem>>, vector<8x1024xf32>
    %c0_1 = arith.constant 0 : index
    %c0_2 = arith.constant 0 : index
    %1 = vector.load %arg2[%c0_1, %c0_2] : memref<8x1024xf32, #tpu.memory_space<vmem>>, vector<8x1024xf32>
    %cst = arith.constant dense<0xFF800000> : vector<8xf32>
    %2 = vector.multi_reduction <maximumf>, %0, %cst [1] : vector<8x1024xf32> to vector<8xf32>
    %3 = vector.shape_cast %2 : vector<8xf32> to vector<8x1xf32>
    %4 = vector.broadcast %3 : vector<8x1xf32> to vector<8x1024xf32>
    %5 = arith.subf %0, %4 : vector<8x1024xf32>
    %6 = math.exp %5 : vector<8x1024xf32>
    %cst_3 = arith.constant dense<0.000000e+00> : vector<8xf32>
    %7 = vector.multi_reduction <add>, %6, %cst_3 [1] : vector<8x1024xf32> to vector<8xf32>
    %8 = vector.shape_cast %7 : vector<8xf32> to vector<8x1xf32>
    %9 = tpu.reciprocal %8 : vector<8x1xf32> -> vector<8x1xf32>
    %10 = vector.broadcast %9 : vector<8x1xf32> to vector<8x1024xf32>
    %11 = arith.mulf %6, %10 : vector<8x1024xf32>
    %cst_4 = arith.constant dense<0xFF800000> : vector<8xf32>
    %12 = vector.multi_reduction <maximumf>, %1, %cst_4 [1] : vector<8x1024xf32> to vector<8xf32>
    %13 = vector.shape_cast %12 : vector<8xf32> to vector<8x1xf32>
    %14 = vector.broadcast %13 : vector<8x1xf32> to vector<8x1024xf32>
    %15 = arith.subf %1, %14 : vector<8x1024xf32>
    %16 = math.exp %15 : vector<8x1024xf32>
    %cst_5 = arith.constant dense<0.000000e+00> : vector<8xf32>
    %17 = vector.multi_reduction <add>, %16, %cst_5 [1] : vector<8x1024xf32> to vector<8xf32>
    %18 = vector.shape_cast %17 : vector<8xf32> to vector<8x1xf32>
    %19 = tpu.reciprocal %18 : vector<8x1xf32> -> vector<8x1xf32>
    %20 = vector.broadcast %19 : vector<8x1xf32> to vector<8x1024xf32>
    %21 = arith.mulf %16, %20 : vector<8x1024xf32>
    %cst_6 = arith.constant 9.99999993E-9 : f32
    %22 = vector.broadcast %cst_6 : f32 to vector<8x1024xf32>
    %23 = arith.addf %21, %22 : vector<8x1024xf32>
    %24 = math.log %23 : vector<8x1024xf32>
    %25 = arith.subf %5, %24 : vector<8x1024xf32>
    %26 = arith.mulf %11, %25 : vector<8x1024xf32>
    %cst_7 = arith.constant dense<0.000000e+00> : vector<8xf32>
    %27 = vector.multi_reduction <add>, %26, %cst_7 [1] : vector<8x1024xf32> to vector<8xf32>
    %28 = vector.shape_cast %27 : vector<8xf32> to vector<8x1xf32>
    %29 = math.log %8 : vector<8x1xf32>
    %30 = arith.subf %28, %29 : vector<8x1xf32>
    %31 = vector.shape_cast %30 : vector<8x1xf32> to vector<8x1xf32>
    %32 = vector.broadcast %31 : vector<8x1xf32> to vector<8x128xf32>
    %c0_8 = arith.constant 0 : index
    %c0_9 = arith.constant 0 : index
    %33 = vector.load %arg3[%c0_8, %c0_9] : memref<8x128xf32, #tpu.memory_space<vmem>>, vector<8x128xf32>
    tpu.vector_store %arg3[%c0_8, %c0_9], %32 {strides = array<i32>} : memref<8x128xf32, #tpu.memory_space<vmem>>, vector<8x128xf32>,
    return
  }
  func.func @transform_0(%arg0: i32) -> (i32, i32) {
    %c0_i32 = arith.constant 0 : i32
    %c0_i32_0 = arith.constant 0 : i32
    return %arg0, %c0_i32 : i32, i32
  }
  func.func @transform_1(%arg0: i32) -> (i32, i32) {
    %c0_i32 = arith.constant 0 : i32
    %c0_i32_0 = arith.constant 0 : i32
    return %arg0, %c0_i32 : i32, i32
  }
  func.func @transform_2(%arg0: i32) -> (i32, i32) {
    %c0_i32 = arith.constant 0 : i32
    %c0_i32_0 = arith.constant 0 : i32
    return %arg0, %c0_i32 : i32, i32
  }
}

</mosaic_0001>

<bundles_post_ra>
// kernel: kl_div_loss.1
= control target key start
LH: loop header
LB: loop body
LE: loop exit
PB: predicated region body
PF: predicated region fallthrough
CT: control target
= control target key end

     0   :  { %s374_s1 = inlined_call_operand.vmem [shape: f32[8,1024], index: 1, kind: input, shape index: {}]   ;;  %s375_s0 = inlined_call_operand.vmem [shape: f32[8,1024], index: 0, kind: input, shape index: {}]   ;;  %s376_s2 = inlined_call_operand.vmem [shape: f32[8,128], index: 2, kind: output, shape index: {}]  }
   0x1   :  { %v19_v0 = vld [vmem:[%s374_s1] sm:$0xff]  ;;  %v20_v1 = vld [vmem:[%s374_s1 + $0x8] sm:$0xff]  ;;  %v21_v2 = vld [vmem:[%s374_s1 + $0x10] sm:$0xff] }
   0x2   :  { %v22_v3 = vld [vmem:[%s374_s1 + $0x18] sm:$0xff]  ;;  %v23_v4 = vld [vmem:[%s374_s1 + $0x20] sm:$0xff]  ;;  %v24_v5 = vld [vmem:[%s374_s1 + $0x28] sm:$0xff] }
   0x3   :  { %v25_v6 = vld [vmem:[%s374_s1 + $0x30] sm:$0xff]  ;;  %v26_v7 = vld [vmem:[%s374_s1 + $0x38] sm:$0xff]  ;;  %v78_v8 = vmax.f32 %v19_v0, %v23_v4  ;;  %v79_v9 = vmax.f32 %v20_v1, %v24_v5  ;;  %v11_v10 = vld [vmem:[%s375_s0] sm:$0xff] }
   0x4   :  { %v80_v11 = vmax.f32 %v21_v2, %v25_v6  ;;  %v81_v12 = vmax.f32 %v22_v3, %v26_v7  ;;  %v12_v13 = vld [vmem:[%s375_s0 + $0x8] sm:$0xff]  ;;  %v13_v14 = vld [vmem:[%s375_s0 + $0x10] sm:$0xff]  ;;  %v14_v15 = vld [vmem:[%s375_s0 + $0x18] sm:$0xff] }
   0x5   :  { %v82_v16 = vmax.f32 %v78_v8, %v79_v9  ;;  %v15_v17 = vld [vmem:[%s375_s0 + $0x20] sm:$0xff]  ;;  %v16_v18 = vld [vmem:[%s375_s0 + $0x28] sm:$0xff]  ;;  %v17_v19 = vld [vmem:[%s375_s0 + $0x30] sm:$0xff] }
   0x6   :  { %v83_v20 = vmax.f32 %v80_v11, %v81_v12  ;;  %v18_v21 = vld [vmem:[%s375_s0 + $0x38] sm:$0xff]  ;;  %v27_v22 = vmax.f32 %v11_v10, %v15_v17  ;;  %v28_v23 = vmax.f32 %v12_v13, %v16_v18  ;;  %v29_v24 = vmax.f32 %v13_v14, %v17_v19 }
   0x7   :  { %v30_v25 = vmax.f32 %v14_v15, %v18_v21 }
   0x8   :  { %v84_v26 = vmax.f32 %v82_v16, %v83_v20  ;;  %v31_v27 = vmax.f32 %v27_v22, %v28_v23 }
   0x9   :  { %v32_v28 = vmax.f32 %v29_v24, %v30_v25 }
   0xa   :  { %85 = vmax.xlane.f32.xlu0 %v84_v26 }
   0xb   :  { %v33_v29 = vmax.f32 %v31_v27, %v32_v28 }
   0xe   :  { %34 = vmax.xlane.f32.xlu0 %v33_v29 }
  0x97   :  { %v86_v30 = vpop.xlane.xlu0 %85 }
  0x98   :  { %v87_v31 = vsub.f32 %v19_v0, %v86_v30  ;;  %v88_v32 = vsub.f32 %v20_v1, %v86_v30  ;;  %v89_v33 = vsub.f32 %v21_v2, %v86_v30  ;;  %v90_v34 = vsub.f32 %v22_v3, %v86_v30 }
  0x99   :  { %v91_v39 = vsub.f32 %v23_v4, %v86_v30  ;;  %v92_v40 = vsub.f32 %v24_v5, %v86_v30  ;;  %v93_v45 = vsub.f32 %v25_v6, %v86_v30  ;;  %v94_v46 = vsub.f32 %v26_v7, %v86_v30 }
  0x9a   :  { %v95_v35 = vmul.f32 1.442695, %v87_v31  ;;  %v97_v36 = vmul.f32 1.442695, %v88_v32  ;;  %v99_v37 = vmul.f32 1.442695, %v89_v33 }
  0x9b   :  { %v35_v38 = vpop.xlane.xlu0 %34  ;;  %v101_v41 = vmul.f32 1.442695, %v90_v34  ;;  %v103_v51 = vmul.f32 1.442695, %v91_v39  ;;  %v105_v53 = vmul.f32 1.442695, %v92_v40 }
  0x9c   :  { %186 = vpow2.f32 %v95_v35  ;;  %v303_v42 = vsub.f32 %v11_v10, %v35_v38  ;;  %v305_v43 = vsub.f32 %v12_v13, %v35_v38  ;;  %v307_v44 = vsub.f32 %v13_v14, %v35_v38 }
  0x9d   :  { %188 = vpow2.f32 %v97_v36  ;;  %v312_v50 = vsub.f32 %v14_v15, %v35_v38  ;;  %v314_v52 = vsub.f32 %v15_v17, %v35_v38  ;;  %v107_v54 = vmul.f32 1.442695, %v93_v45 }
  0x9e   :  { %190 = vpow2.f32 %v99_v37  ;;  %v44_v47 = vmul.f32 1.442695, %v303_v42  ;;  %v46_v48 = vmul.f32 1.442695, %v305_v43  ;;  %v48_v49 = vmul.f32 1.442695, %v307_v44 }
  0x9f   :  { %192 = vpow2.f32 %v101_v41  ;;  %v316_v55 = vsub.f32 %v16_v18, %v35_v38  ;;  %v109_v56 = vmul.f32 1.442695, %v94_v46  ;;  %v318_v57 = vsub.f32 %v17_v19, %v35_v38 }
  0xa0   :  { %194 = vpow2.f32 %v44_v47  ;;  %v50_v58 = vmul.f32 1.442695, %v312_v50  ;;  %v52_v59 = vmul.f32 1.442695, %v314_v52  ;;  %v322_v60 = vsub.f32 %v18_v21, %v35_v38 }
  0xa1   :  { %196 = vpow2.f32 %v46_v48  ;;  %v54_v61 = vmul.f32 1.442695, %v316_v55  ;;  %v56_v0 = vmul.f32 1.442695, %v318_v57 }
  0xa2   :  { %198 = vpow2.f32 %v48_v49  ;;  %v58_v4 = vmul.f32 1.442695, %v322_v60 }
  0xa3   :  { %200 = vpow2.f32 %v103_v51 }
  0xa4   :  { %202 = vpow2.f32 %v105_v53 }
  0xa5   :  { %204 = vpow2.f32 %v107_v54 }
  0xa6   :  { %v187_v62 = vpop.eup %186  ;;  %206 = vpow2.f32 %v109_v56 }
  0xa7   :  { %v189_v63 = vpop.eup %188  ;;  %208 = vpow2.f32 %v50_v58 }
  0xa8   :  { %v191_v1 = vpop.eup %190  ;;  %v111_v2 = vadd.f32 %v189_v63, %v187_v62  ;;  %210 = vpow2.f32 %v52_v59 }
  0xa9   :  { %v193_v3 = vpop.eup %192  ;;  %212 = vpow2.f32 %v54_v61 }
  0xaa   :  { %v327_v5 = vpop.eup %194  ;;  %v112_v6 = vadd.f32 %v191_v1, %v111_v2  ;;  %214 = vpow2.f32 %v56_v0 }
  0xab   :  { %v329_v7 = vpop.eup %196  ;;  %216 = vpow2.f32 %v58_v4 }
  0xac   :  { %v331_v8 = vpop.eup %198  ;;  %v113_v9 = vadd.f32 %v193_v3, %v112_v6  ;;  %v60_v10 = vadd.f32 %v329_v7, %v327_v5 }
  0xad   :  { %v201_v11 = vpop.eup %200 }
  0xae   :  { %v203_v12 = vpop.eup %202  ;;  %v114_v13 = vadd.f32 %v201_v11, %v113_v9  ;;  %v61_v14 = vadd.f32 %v331_v8, %v60_v10 }
  0xaf   :  { %v205_v15 = vpop.eup %204 }
  0xb0   :  { %v207_v16 = vpop.eup %206  ;;  %v115_v17 = vadd.f32 %v203_v12, %v114_v13 }
  0xb1   :  { %v336_v18 = vpop.eup %208 }
  0xb2   :  { %v338_v19 = vpop.eup %210  ;;  %v116_v20 = vadd.f32 %v205_v15, %v115_v17  ;;  %v62_v21 = vadd.f32 %v336_v18, %v61_v14 }
  0xb3   :  { %v341_v22 = vpop.eup %212 }
  0xb4   :  { %v117_v23 = vadd.f32 %v207_v16, %v116_v20  ;;  %v63_v24 = vadd.f32 %v338_v19, %v62_v21  ;;  %v344_v25 = vpop.eup %214 }
  0xb5   :  { %v347_v27 = vpop.eup %216 }
  0xb6   :  { %118 = vadd.xlane.f32.xlu1 %v117_v23  ;;  %v64_v26 = vadd.f32 %v341_v22, %v63_v24 }
  0xb8   :  { %v65_v28 = vadd.f32 %v344_v25, %v64_v26 }
  0xba   :  { %v66_v29 = vadd.f32 %v347_v27, %v65_v28 }
  0xbc   :  { %67 = vadd.xlane.f32.xlu1 %v66_v29 }
 0x143   :  { %v119_v30 = vpop.xlane.xlu1 %118 }
 0x144   :  { %218 = vrcp.f32 %v119_v30 }
 0x149   :  { %v351_v32 = vpop.xlane.xlu1 %67 }
 0x14a   :  { %220 = vrcp.f32 %v351_v32 }
 0x14e   :  { %v219_v31 = vpop.eup %218 }
 0x14f   :  { %v121_v33 = vmul.f32 %v219_v31, %v187_v62  ;;  %v122_v34 = vmul.f32 %v219_v31, %v189_v63  ;;  %v123_v35 = vmul.f32 %v219_v31, %v191_v1  ;;  %v124_v36 = vmul.f32 %v219_v31, %v193_v3 }
 0x150   :  { %v125_v37 = vmul.f32 %v219_v31, %v201_v11  ;;  %v126_v40 = vmul.f32 %v219_v31, %v203_v12  ;;  %v127_v41 = vmul.f32 %v219_v31, %v205_v15  ;;  %v128_v46 = vmul.f32 %v219_v31, %v207_v16 }
 0x151   :  { %v129_v38 = vadd.f32 1e-08, %v121_v33  ;;  %v130_v39 = vadd.f32 1e-08, %v122_v34  ;;  %v131_v45 = vadd.f32 1e-08, %v123_v35 }
 0x152   :  { %v132_v47 = vadd.f32 1e-08, %v124_v36  ;;  %v133_v48 = vadd.f32 1e-08, %v125_v37  ;;  %v134_v49 = vadd.f32 1e-08, %v126_v40 }
 0x153   :  { %222 = vlog2.f32 %v129_v38  ;;  %v135_v51 = vadd.f32 1e-08, %v127_v41  ;;  %v136_v53 = vadd.f32 1e-08, %v128_v46 }
 0x154   :  { %224 = vlog2.f32 %v130_v39  ;;  %v221_v54 = vpop.eup %220 }
 0x155   :  { %226 = vlog2.f32 %v131_v45  ;;  %v70_v62 = vmul.f32 %v221_v54, %v327_v5  ;;  %v71_v1 = vmul.f32 %v221_v54, %v329_v7  ;;  %v72_v13 = vmul.f32 %v221_v54, %v331_v8 }
 0x156   :  { %228 = vlog2.f32 %v132_v47  ;;  %v74_v24 = vmul.f32 %v221_v54, %v338_v19  ;;  %v76_v33 = vmul.f32 %v221_v54, %v344_v25  ;;  %v77_v35 = vmul.f32 %v221_v54, %v347_v27 }
 0x157   :  { %230 = vlog2.f32 %v133_v48 }
 0x158   :  { %232 = vlog2.f32 %v134_v49 }
 0x159   :  { %234 = vlog2.f32 %v135_v51 }
 0x15a   :  { %236 = vlog2.f32 %v136_v53 }
 0x15b   :  { %238 = vlog2.f32 %v351_v32 }
 0x15d   :  { %v223_v56 = vpop.eup %222 }
 0x15e   :  { %v225_v58 = vpop.eup %224  ;;  %v138_v59 = vmul.f32 0.6931472, %v223_v56 }
 0x15f   :  { %v140_v61 = vmul.f32 0.6931472, %v225_v58  ;;  %v227_v0 = vpop.eup %226 }
 0x160   :  { %v153_v63 = vsub.f32 %v303_v42, %v138_v59  ;;  %v229_v3 = vpop.eup %228  ;;  %v142_v4 = vmul.f32 0.6931472, %v227_v0 }
 0x161   :  { %v154_v2 = vsub.f32 %v305_v43, %v140_v61  ;;  %v231_v9 = vpop.eup %230  ;;  %v144_v10 = vmul.f32 0.6931472, %v229_v3  ;;  %v73_v43 = vmul.f32 %v221_v54, %v336_v18 }
 0x162   :  { %v161_v6 = vmul.f32 %v153_v63, %v70_v62  ;;  %v233_v12 = vpop.eup %232  ;;  %v146_v14 = vmul.f32 0.6931472, %v231_v9  ;;  %v155_v15 = vsub.f32 %v307_v44, %v142_v4  ;;  %v75_v44 = vmul.f32 %v221_v54, %v341_v22 }
 0x163   :  { %v162_v11 = vmul.f32 %v154_v2, %v71_v1  ;;  %v235_v5 = vpop.eup %234  ;;  %v148_v16 = vmul.f32 0.6931472, %v233_v12  ;;  %v156_v42 = vsub.f32 %v312_v50, %v144_v10 }
 0x164   :  { %v237_v7 = vpop.eup %236  ;;  %v150_v20 = vmul.f32 0.6931472, %v235_v5  ;;  %v157_v21 = vsub.f32 %v314_v52, %v146_v14  ;;  %v163_v23 = vmul.f32 %v155_v15, %v72_v13 }
 0x165   :  { %v169_v17 = vadd.f32 %v162_v11, %v161_v6  ;;  %v152_v26 = vmul.f32 0.6931472, %v237_v7  ;;  %v158_v8 = vsub.f32 %v316_v55, %v148_v16  ;;  %v164_v28 = vmul.f32 %v156_v42, %v73_v43  ;;  %v239_v22 = vpop.eup %238 }
 0x166   :  { %v159_v30 = vsub.f32 %v318_v57, %v150_v20  ;;  %v165_v50 = vmul.f32 %v157_v21, %v74_v24  ;;  %v179_v57 = vmul.f32 0.6931472, %v239_v22 }
 0x167   :  { %v170_v29 = vadd.f32 %v169_v17, %v163_v23  ;;  %v160_v18 = vsub.f32 %v322_v60, %v152_v26  ;;  %v166_v34 = vmul.f32 %v158_v8, %v75_v44 }
 0x168   :  { %v167_v19 = vmul.f32 %v159_v30, %v76_v33 }
 0x169   :  { %v171_v31 = vadd.f32 %v170_v29, %v164_v28  ;;  %v168_v37 = vmul.f32 %v160_v18, %v77_v35 }
 0x16b   :  { %v172_v52 = vadd.f32 %v171_v31, %v165_v50 }
 0x16d   :  { %v173_v36 = vadd.f32 %v172_v52, %v166_v34 }
 0x16f   :  { %v174_v55 = vadd.f32 %v173_v36, %v167_v19 }
 0x171   :  { %v175_v38 = vadd.f32 %v174_v55, %v168_v37 }
 0x173   :  { %176 = vadd.xlane.f32.xlu0 %v175_v38 }
 0x200   :  { %v177_v39 = vpop.xlane.xlu0 %176 }
 0x201   :  { %v180_v40 = vsub.f32 %v177_v39, %v179_v57 }
 0x203   :  { %181 = vst [vmem:[%s376_s2] sm:$0xff] %v180_v40 }

</bundles_post_ra>
